<compile_context>
chip_gen: v5e
topology: v5e:2x2
jax: 0.10.0
libtpu: 0.0.40
codegen_flags: <defaults>
</compile_context>

<pallas_src>
import numpy as np
import jax
import jax.numpy as jnp
from jax.experimental import pallas as pl
from jax.experimental.pallas import tpu as pltpu

# get_bond_feature_dims() from OGB: [bond type, bond stereo, is_conjugated]
FULL_BOND_FEATURE_DIMS = [5, 6, 2]


def _bond_encoder_kernel(idx_ref, sel_ref, cmp_ref, table_ref, out_ref):
    # idx_ref:   [tile_r, G*F] int32 raw codes; row r packs edges r*G..r*G+G-1
    #            (column g*F + f is feature f of packed edge g).
    # sel_ref:   [G*F, G*V] f32 0/1 selection matrix; dot(idx, sel)[r, c]
    #            replicates idx[r, src_col(c)] across that feature's columns.
    # cmp_ref:   [1, G*V] f32; column c of the multi-hot is 1 iff the
    #            replicated raw code equals cmp[c].
    # table_ref: [G*V, G*D] f32 block-diagonal table kron(I_G, concat(tables)).
    # out_ref:   [tile_r, G*D] packed, lane-dense output.
    idx_f = idx_ref[...].astype(jnp.float32)                       # [R, G*F]
    expanded = jnp.dot(idx_f, sel_ref[...],
                       preferred_element_type=jnp.float32)          # [R, G*V]
    # Small-integer values and 0/1 weights -> the matmul and this float
    # equality are exact.
    multi_hot = (expanded == cmp_ref[...]).astype(jnp.float32)      # [R, G*V]
    out = jnp.dot(multi_hot, table_ref[...],
                  preferred_element_type=jnp.float32)               # [R, G*D]
    out_ref[...] = out.astype(out_ref.dtype)


def _pick_groups(emb_dim, vocab):
    """Largest G with G*vocab <= 128 (multi-hot in one lane group) and
    G*emb_dim % 128 == 0 (unmasked full-width output stores)."""
    best = 0
    for g in range(1, max(1, 128 // vocab) + 1):
        if (g * emb_dim) % 128 == 0:
            best = g
    if best == 0:
        best = max(1, 128 // vocab)   # fallback: maximize multi-hot lane use
    return best


def _selection_constants(feat_dims, groups):
    """0/1 expansion matrix [G*F, G*V] and compare row [1, G*V] (numpy)."""
    F = len(feat_dims)
    V = int(sum(feat_dims))
    offsets = np.cumsum([0] + list(feat_dims[:-1])).astype(np.int64)
    C = groups * V
    sel = np.zeros((groups * F, C), np.float32)
    cmp = np.zeros((1, C), np.float32)
    for g in range(groups):
        for f in range(F):
            for v in range(feat_dims[f]):
                c = g * V + int(offsets[f]) + v
                sel[g * F + f, c] = 1.0
                cmp[0, c] = float(v)
    return sel, cmp


def pack_bond_tables(tables, groups):
    """Block-diagonal table kron(I_G, concat(tables)) -> [G*V, G*D].

    Build this ONCE at parameter-init time and pass it to bond_encoder so the
    expanded table is not re-materialized on every forward call.
    """
    table_cat = jnp.concatenate([t.astype(jnp.float32) for t in tables], axis=0)
    return jnp.kron(jnp.eye(groups, dtype=jnp.float32), table_cat)


def init_bond_encoder_params(emb_dim, key):
    """Xavier-uniform init for each embedding table, matching the PyTorch init."""
    tables = []
    for dim in FULL_BOND_FEATURE_DIMS:
        key, sub = jax.random.split(key)
        bound = float(np.sqrt(6.0 / (dim + emb_dim)))
        tables.append(jax.random.uniform(sub, (dim, emb_dim), jnp.float32,
                                         minval=-bound, maxval=bound))
    return tables


def bond_encoder(edge_attr, tables, *, packed_table=None, tile_e=16384,
                 out_dtype=jnp.float32):
    """edge_attr: [E, F] int, tables: list of [dim_f, D] -> [E, D] out_dtype.

    packed_table: optional precomputed pack_bond_tables(tables, G) (G from
    _pick_groups). out_dtype=jnp.bfloat16 halves output HBM traffic (the
    kernel is write-bandwidth bound); default float32 matches PyTorch.
    """
    edge_attr = edge_attr.astype(jnp.int32)
    E, F = edge_attr.shape
    assert F == len(tables)
    D = int(tables[0].shape[1])
    dims = tuple(int(t.shape[0]) for t in tables)
    V = int(sum(dims))

    G = _pick_groups(D, V)          # 8 for D=32, V=13
    C = G * V                       # 104: one 128-lane group for the multi-hot

    # Pad E so the packed row count R is a multiple of 8 (sublane tile);
    # at most 8*G - 1 padded edges (constant cost), sliced off at the end.
    E_grp = -(-E // (8 * G)) * (8 * G)
    if E_grp != E:
        edge_attr = jnp.pad(edge_attr, ((0, E_grp - E), (0, 0)))
    R = E_grp // G
    idx_packed = edge_attr.reshape(R, G * F)      # row-major view: free repack

    if packed_table is None:
        packed_table = pack_bond_tables(tables, G)   # prefer hoisting to init
    assert packed_table.shape == (C, G * D)
    sel_np, cmp_np = _selection_constants(dims, G)

    # Large tiles amortize the ~0.35us per-grid-step overhead; cap so the
    # 1-D grid keeps >= 2 steps where possible (lets the "parallel" axis shard
    # across both v7x TensorCores; no-op on v5e/v6e). At tile_r=2048, G=8 the
    # double-buffered blocks total ~6 MB (fits v5e's 16 MiB default scoped
    # VMEM); raise vmem_limit_bytes if you push tile_e higher on v5e.
    tile_cap = max(8, (tile_e // G) // 8 * 8)
    half_rows = ((R + 1) // 2 + 7) // 8 * 8
    tile_r = max(8, min(tile_cap, half_rows))
    grid = (pl.cdiv(R, tile_r),)

    out_packed = pl.pallas_call(
        _bond_encoder_kernel,
        out_shape=jax.ShapeDtypeStruct((R, G * D), out_dtype),
        grid_spec=pltpu.PrefetchScalarGridSpec(
            num_scalar_prefetch=0,
            grid=grid,
            in_specs=[
                pl.BlockSpec((tile_r, G * F), lambda i: (i, 0)),  # packed codes
                pl.BlockSpec((G * F, C), lambda i: (0, 0)),       # selection matrix
                pl.BlockSpec((1, C), lambda i: (0, 0)),           # compare row
                pl.BlockSpec((C, G * D), lambda i: (0, 0)),       # block-diag table
            ],
            out_specs=pl.BlockSpec((tile_r, G * D), lambda i: (i, 0)),
        ),
        compiler_params=pltpu.CompilerParams(
            dimension_semantics=("parallel",)),   # shards E across TCs on v7x
    )(idx_packed, jnp.asarray(sel_np), jnp.asarray(cmp_np), packed_table)

    # Free row-major reshape; the [:E] slice fuses into downstream consumers
    # under jit (only the at-most-63 padded rows are dropped).
    out = out_packed.reshape(E_grp, D)
    return out if E_grp == E else out[:E]


def bond_encoder_ref(edge_attr, tables):
    """Pure-JAX reference (matches the PyTorch forward)."""
    out = 0
    for f in range(edge_attr.shape[1]):
        out = out + tables[f][edge_attr[:, f]]
    return out


def _make_edge_attr(key, num_edges):
    idx_keys = jax.random.split(key, len(FULL_BOND_FEATURE_DIMS))
    cols = [jax.random.randint(idx_keys[f], (num_edges,), 0,
                               FULL_BOND_FEATURE_DIMS[f], dtype=jnp.int32)
            for f in range(len(FULL_BOND_FEATURE_DIMS))]
    return jnp.stack(cols, axis=1)  # [E, F]


if __name__ == "__main__":
    key = jax.random.PRNGKey(0)
    emb_dim = 32

    k_tab, k_idx1, k_idx2 = jax.random.split(key, 3)
    tables = init_bond_encoder_params(emb_dim, k_tab)

    # Hoist the block-diagonal table construction out of the per-call path.
    groups = _pick_groups(emb_dim, sum(FULL_BOND_FEATURE_DIMS))
    packed_table = pack_bond_tables(tables, groups)

    run = jax.jit(bond_encoder, static_argnames=("tile_e", "out_dtype"))

    # Small case (E deliberately not a multiple of the packing group or tile).
    edge_attr = _make_edge_attr(k_idx1, 50)
    out = jax.block_until_ready(run(edge_attr, tables, packed_table=packed_table))
    ref = bond_encoder_ref(edge_attr, tables)
    np.testing.assert_allclose(np.asarray(out), np.asarray(ref),
                               rtol=1e-5, atol=1e-5)

    # Larger case: exercises a multi-step grid (>=2 steps) with a ragged last tile.
    edge_attr2 = _make_edge_attr(k_idx2, 3000)
    out2 = jax.block_until_ready(run(edge_attr2, tables, packed_table=packed_table))
    ref2 = bond_encoder_ref(edge_attr2, tables)
    np.testing.assert_allclose(np.asarray(out2), np.asarray(ref2),
                               rtol=1e-5, atol=1e-5)

    print("KERNEL_OK")
</pallas_src>

<mosaic_0001>
module attributes {stable_mosaic.version = 11 : i64} {
  func.func @_bond_encoder_kernel(%arg0: i32, %arg1: memref<8x24xi32, #tpu.memory_space<vmem>>, %arg2: memref<24x104xf32, #tpu.memory_space<vmem>>, %arg3: memref<1x104xf32, #tpu.memory_space<vmem>>, %arg4: memref<104x256xf32, #tpu.memory_space<vmem>>, %arg5: memref<8x256xf32, #tpu.memory_space<vmem>>) attributes {dimension_semantics = [#tpu.dimension_semantics<parallel>], iteration_bounds = array<i64: 1>, scalar_prefetch = 0 : i64, scratch_operands = 0 : i64, tpu.core_type = #tpu.core_type<tc>, window_params = [{transform_indices = @transform_0, window_bounds = array<i64: 8, 24>}, {pipeline_mode = #tpu.pipeline_mode<synchronous>, transform_indices = @transform_1, window_bounds = array<i64: 24, 104>}, {pipeline_mode = #tpu.pipeline_mode<synchronous>, transform_indices = @transform_2, window_bounds = array<i64: 1, 104>}, {pipeline_mode = #tpu.pipeline_mode<synchronous>, transform_indices = @transform_3, window_bounds = array<i64: 104, 256>}, {transform_indices = @transform_4, window_bounds = array<i64: 8, 256>}]} {
    %c0 = arith.constant 0 : index
    %c0_0 = arith.constant 0 : index
    %0 = vector.load %arg1[%c0, %c0_0] : memref<8x24xi32, #tpu.memory_space<vmem>>, vector<8x24xi32>
    %1 = arith.sitofp %0 : vector<8x24xi32> to vector<8x24xf32>
    %c0_1 = arith.constant 0 : index
    %c0_2 = arith.constant 0 : index
    %2 = vector.load %arg2[%c0_1, %c0_2] : memref<24x104xf32, #tpu.memory_space<vmem>>, vector<24x104xf32>
    %cst = arith.constant dense<0.000000e+00> : vector<8x104xf32>
    %3 = tpu.matmul %1, %2, %cst {dimension_numbers = #tpu.dot_dimension_numbers<[1], [0], [0], [1], [0, 0, 1, 1], [], []>} : vector<8x24xf32>, vector<24x104xf32>, vector<8x104xf32> -> vector<8x104xf32>
    %c0_3 = arith.constant 0 : index
    %c0_4 = arith.constant 0 : index
    %4 = vector.load %arg3[%c0_3, %c0_4] : memref<1x104xf32, #tpu.memory_space<vmem>>, vector<1x104xf32>
    %5 = vector.broadcast %4 : vector<1x104xf32> to vector<8x104xf32>
    %6 = arith.cmpf oeq, %3, %5 : vector<8x104xf32>
    %7 = arith.extui %6 : vector<8x104xi1> to vector<8x104xi32>
    %8 = arith.sitofp %7 : vector<8x104xi32> to vector<8x104xf32>
    %c0_5 = arith.constant 0 : index
    %c0_6 = arith.constant 0 : index
    %9 = vector.load %arg4[%c0_5, %c0_6] : memref<104x256xf32, #tpu.memory_space<vmem>>, vector<104x256xf32>
    %cst_7 = arith.constant dense<0.000000e+00> : vector<8x256xf32>
    %10 = tpu.matmul %8, %9, %cst_7 {dimension_numbers = #tpu.dot_dimension_numbers<[1], [0], [0], [1], [0, 0, 1, 1], [], []>} : vector<8x104xf32>, vector<104x256xf32>, vector<8x256xf32> -> vector<8x256xf32>
    %c0_8 = arith.constant 0 : index
    %c0_9 = arith.constant 0 : index
    %11 = vector.load %arg5[%c0_8, %c0_9] : memref<8x256xf32, #tpu.memory_space<vmem>>, vector<8x256xf32>
    tpu.vector_store %arg5[%c0_8, %c0_9], %10 {strides = array<i32>} : memref<8x256xf32, #tpu.memory_space<vmem>>, vector<8x256xf32>,
    return
  }
  func.func @transform_0(%arg0: i32) -> (i32, i32) {
    %c0_i32 = arith.constant 0 : i32
    %c0_i32_0 = arith.constant 0 : i32
    return %arg0, %c0_i32 : i32, i32
  }
  func.func @transform_1(%arg0: i32) -> (i32, i32) {
    %c0_i32 = arith.constant 0 : i32
    %c0_i32_0 = arith.constant 0 : i32
    %c0_i32_1 = arith.constant 0 : i32
    return %c0_i32, %c0_i32_0 : i32, i32
  }
  func.func @transform_2(%arg0: i32) -> (i32, i32) {
    %c0_i32 = arith.constant 0 : i32
    %c0_i32_0 = arith.constant 0 : i32
    %c0_i32_1 = arith.constant 0 : i32
    return %c0_i32, %c0_i32_0 : i32, i32
  }
  func.func @transform_3(%arg0: i32) -> (i32, i32) {
    %c0_i32 = arith.constant 0 : i32
    %c0_i32_0 = arith.constant 0 : i32
    %c0_i32_1 = arith.constant 0 : i32
    return %c0_i32, %c0_i32_0 : i32, i32
  }
  func.func @transform_4(%arg0: i32) -> (i32, i32) {
    %c0_i32 = arith.constant 0 : i32
    %c0_i32_0 = arith.constant 0 : i32
    return %arg0, %c0_i32 : i32, i32
  }
}

</mosaic_0001>

<bundles_post_ra>
// kernel: bond_encoder.1
= control target key start
LH: loop header
LB: loop body
LE: loop exit
PB: predicated region body
PF: predicated region fallthrough
CT: control target
= control target key end

     0   :  { %vm22_vm0 = vcmask 195584   ;;  %vm79_vm1 = vcmask 850944   ;;  %v135_v33 = vmov 0.0   ;;  %s260_s1 = inlined_call_operand.vmem [shape: f32[24,104], index: 1, kind: input, shape index: {}]   ;;  %s261_s0 = inlined_call_operand.vmem [shape: s32[8,24], index: 0, kind: input, shape index: {}]   ;;  %s262_s3 = inlined_call_operand.vmem [shape: f32[104,256], index: 3, kind: input, shape index: {}]   ;;  %s263_s2 = inlined_call_operand.vmem [shape: f32[1,104], index: 2, kind: input, shape index: {}]   ;;  %s264_s4 = inlined_call_operand.vmem [shape: f32[8,256], index: 4, kind: output, shape index: {}]  }
   0x1   :  { %v21_v0 = vld [vmem:[%s260_s1 + $0x10] sm:$0xff]  ;;  %v20_v1 = vld [vmem:[%s260_s1 + $0x8] sm:$0xff]  ;;  %v17_v2 = vld [vmem:[%s261_s0] sm:$0xff] }
   0x2   :  { %39 = vmatpush.msra.mxu0 %v21_v0  ;;  %v77_v3 = vld [vmem:[%s262_s3 + $0xc0] sm:$0xff]  ;;  %v78_v4 = vld [vmem:[%s262_s3 + $0xc8] sm:$0xff]  ;;  %v18_v6 = vcvt.s32.f32 %v17_v2  ;;  %v75_v7 = vld [vmem:[%s262_s3 + $0xb0] sm:$0xff] }
   0x3   :  { %v19_v5 = vld [vmem:[%s260_s1] sm:$0xff]  ;;  %86 = vmatpush.msra.mxu1 %v77_v3  ;;  %106 = vmatpush.msra.mxu2 %v78_v4  ;;  %v76_v8 = vld [vmem:[%s262_s3 + $0xb8] sm:$0xff]  ;;  %v74_v10 = vld [vmem:[%s262_s3 + $0xa8] sm:$0xff] }
   0x4   :  { %40 = vmatpush.msra.mxu0 %v20_v1  ;;  %v73_v9 = vld [vmem:[%s262_s3 + $0xa0] sm:$0xff]  ;;  %v71_v11 = vld [vmem:[%s262_s3 + $0x90] sm:$0xff]  ;;  %v72_v12 = vld [vmem:[%s262_s3 + $0x98] sm:$0xff] }
   0x5   :  { %87 = vmatpush.msra.mxu1 %v75_v7  ;;  %107 = vmatpush.msra.mxu2 %v76_v8  ;;  %v69_v13 = vld [vmem:[%s262_s3 + $0x80] sm:$0xff]  ;;  %v70_v14 = vld [vmem:[%s262_s3 + $0x88] sm:$0xff]  ;;  %v67_v15 = vld [vmem:[%s262_s3 + $0x70] sm:$0xff] }
   0x6   :  { %41 = vmatpush.msra.mxu0 %v19_v5  ;;  %v68_v16 = vld [vmem:[%s262_s3 + $0x78] sm:$0xff]  ;;  %v65_v17 = vld [vmem:[%s262_s3 + $0x60] sm:$0xff]  ;;  %v66_v18 = vld [vmem:[%s262_s3 + $0x68] sm:$0xff] }
   0x7   :  { %129 = vmatmul.msk.f32.vlgmr.msra.gmra.mxu0 %vm22_vm0, %v18_v6  ;;  %88 = vmatpush.msra.mxu1 %v73_v9  ;;  %v63_v19 = vld [vmem:[%s262_s3 + $0x50] sm:$0xff]  ;;  %v64_v20 = vld [vmem:[%s262_s3 + $0x58] sm:$0xff]  ;;  %v61_v21 = vld [vmem:[%s262_s3 + $0x40] sm:$0xff] }
   0x8   :  { %108 = vmatpush.msra.mxu2 %v74_v10  ;;  %v62_v22 = vld [vmem:[%s262_s3 + $0x48] sm:$0xff]  ;;  %v59_v23 = vld [vmem:[%s262_s3 + $0x30] sm:$0xff]  ;;  %v60_v24 = vld [vmem:[%s262_s3 + $0x38] sm:$0xff] }
   0x9   :  { %89 = vmatpush.msra.mxu1 %v71_v11  ;;  %v57_v25 = vld [vmem:[%s262_s3 + $0x20] sm:$0xff]  ;;  %v58_v26 = vld [vmem:[%s262_s3 + $0x28] sm:$0xff]  ;;  %v55_v27 = vld [vmem:[%s262_s3 + $0x10] sm:$0xff] }
   0xa   :  { %109 = vmatpush.msra.mxu2 %v72_v12  ;;  %v56_v28 = vld [vmem:[%s262_s3 + $0x18] sm:$0xff]  ;;  %v53_v29 = vld [vmem:[%s262_s3] sm:$0xff]  ;;  %v54_v30 = vld [vmem:[%s262_s3 + $0x8] sm:$0xff] }
   0xb   :  { %90 = vmatpush.msra.mxu1 %v69_v13  ;;  %v134_v31 = vld [vmem:[%s263_s2] ss:$0 sm:$0xff] }
   0xc   :  { %110 = vmatpush.msra.mxu2 %v70_v14 }
   0xd   :  { %91 = vmatpush.msra.mxu1 %v67_v15 }
   0xe   :  { %111 = vmatpush.msra.mxu2 %v68_v16 }
   0xf   :  { %92 = vmatpush.msra.mxu1 %v65_v17 }
  0x10   :  { %112 = vmatpush.msra.mxu2 %v66_v18 }
  0x11   :  { %93 = vmatpush.msra.mxu1 %v63_v19 }
  0x12   :  { %113 = vmatpush.msra.mxu2 %v64_v20 }
  0x13   :  { %94 = vmatpush.msra.mxu1 %v61_v21 }
  0x14   :  { %114 = vmatpush.msra.mxu2 %v62_v22 }
  0x15   :  { %95 = vmatpush.msra.mxu1 %v59_v23 }
  0x16   :  { %115 = vmatpush.msra.mxu2 %v60_v24 }
  0x17   :  { %96 = vmatpush.msra.mxu1 %v57_v25 }
  0x18   :  { %116 = vmatpush.msra.mxu2 %v58_v26 }
  0x19   :  { %97 = vmatpush.msra.mxu1 %v55_v27 }
  0x1a   :  { %117 = vmatpush.msra.mxu2 %v56_v28 }
  0x1b   :  { %98 = vmatpush.msra.mxu1 %v53_v29 }
  0x1c   :  { %118 = vmatpush.msra.mxu2 %v54_v30 }
  0x84   :  { %v43_v32 = vpop.f32.mrf.mxu0 }
  0x85   :  { %vm50_vm2 = vcmp.eq.f32.partialorder %v43_v32, %v134_v31 }
  0x86   :  { %v130_v34 = vsel %vm50_vm2, 1.0, %v135_v33 }
  0x87   :  { %131 = vmatmul.msk.f32.vlgmr.msra.gmra.mxu1 %vm79_vm1, %v130_v34  ;;  %132 = vmatmul.msk.f32.vlgmr.msra.gmra.mxu2 %vm79_vm1, %v130_v34 }
 0x104   :  { %v100_v35 = vpop.f32.mrf.mxu1 }
 0x105   :  { %123 = vst [vmem:[%s264_s4] sm:$0xff] %v100_v35 }
 0x10a   :  { %v120_v36 = vpop.f32.mrf.mxu2 }
 0x10b   :  { %124 = vst [vmem:[%s264_s4 + $0x8] sm:$0xff] %v120_v36 }

</bundles_post_ra>
